<compile_context>
chip_gen: v5e
topology: v5e:2x2
jax: 0.10.0
libtpu: 0.0.40
codegen_flags: <defaults>
</compile_context>

<pallas_src>
import functools

import jax
import jax.numpy as jnp
from jax.experimental import pallas as pl
from jax.experimental.pallas import tpu as pltpu


def _round_up(x, m):
    return (x + m - 1) // m * m


# ---------------------------------------------------------------------------
# Kernel
# ---------------------------------------------------------------------------
def vit_input_kernel(p_ref, w_ref, b_ref, cls_ref, pos_ref, o_ref):
    # p_ref:   (Bb*N, Kp)   bf16 im2col'd patches (K zero-padded to Kp)
    # w_ref:   (Kp, D)      bf16 conv weight, reshaped to (in, out), rows padded
    # b_ref:   (1, D)       f32 conv bias
    # cls_ref: (1, D)       f32 cls token
    # pos_ref: (N+1, D)     f32 positional embedding
    # o_ref:   (Bb, N+1, D) f32 output tokens
    Bb, Np1, D = o_ref.shape
    N = Np1 - 1

    # Hoist parameter loads / small adds once (JAX does not CSE them).
    bias = b_ref[...]                                              # (1, D)
    pos = pos_ref[...]                                             # (N+1, D)
    cls_row = (cls_ref[...] + pos[0:1, :]).astype(o_ref.dtype)     # (1, D)
    patch_add = pos[1:, :] + bias                                  # (N, D)

    # Patch embedding: one large-M bf16 matmul with f32 accumulation on the MXU.
    emb = jnp.dot(p_ref[...], w_ref[...],
                  preferred_element_type=jnp.float32)              # (Bb*N, D)

    # Sliced stores -- no concatenate / whole-block register assembly.
    # (The token axis N+1 is not a multiple of 8, so the last sublane group of
    #  each slab is a masked vst; acceptable, the vst slot has spare capacity.)
    for bi in range(Bb):                                           # static, Bb <= 8
        o_ref[bi, 0:1, :] = cls_row
        o_ref[bi, 1:, :] = (emb[bi * N:(bi + 1) * N, :]
                            + patch_add).astype(o_ref.dtype)


# ---------------------------------------------------------------------------
# Wrapper
# ---------------------------------------------------------------------------
def extract_patches(x, patch_size, k_pad, compute_dtype):
    """(B, C, H, W) -> (B*N, Kp). Patch order (b, i, j) row-major; per-patch
    feature order (c, ki, kj) -- matches Conv2d OIHW weight layout.  Transpose,
    bf16 cast and zero-pad fuse into one XLA pass under jit."""
    B, C, H, W = x.shape
    nh, nw = H // patch_size, W // patch_size
    K = C * patch_size * patch_size
    xp = x.reshape(B, C, nh, patch_size, nw, patch_size)
    xp = xp.transpose(0, 2, 4, 1, 3, 5)                   # (B, nh, nw, C, ps, ps)
    xp = xp.reshape(B * nh * nw, K).astype(compute_dtype)
    if k_pad > K:
        xp = jnp.pad(xp, ((0, 0), (0, k_pad - K)))
    return xp


def prepare_params(conv_w, conv_b, cls_token, pos_emb,
                   compute_dtype=jnp.bfloat16):
    """Pre-reshape the PyTorch-layout parameters for the kernel."""
    D, C, ps, _ = conv_w.shape
    K = C * ps * ps
    Kp = _round_up(K, 128)
    w_mat = conv_w.reshape(D, K).T                        # (K, D)
    w_mat = jnp.pad(w_mat, ((0, Kp - K), (0, 0))).astype(compute_dtype)
    return {
        "w_mat": w_mat,                                   # (Kp, D) bf16
        "b2d":   conv_b.reshape(1, D).astype(jnp.float32),
        "cls2d": cls_token.reshape(1, D).astype(jnp.float32),
        "pos2d": pos_emb.reshape(-1, D).astype(jnp.float32),
    }


def vit_input_layer(x, params, *, patch_size, block_b=None,
                    compute_dtype=jnp.bfloat16):
    """x: (B, C, H, W) float32. Returns (B, N+1, D) float32."""
    B, C, H, W = x.shape
    N = (H // patch_size) * (W // patch_size)
    Kp, D = params["w_mat"].shape

    if block_b is None:
        # Keep the grid length >= 2 (DMA/compute pipelining; megacore sharding
        # on v7x), cap block_b at 8 (v7x: 64 MiB VMEM), and only fold multiple
        # batch elements into one matmul M when N is a multiple of 8 (otherwise
        # the per-batch slice of the result would force a sublane relayout).
        max_bb = 8 if N % 8 == 0 else 1
        block_b = 1
        for cand in range(min(max_bb, max(B // 2, 1)), 0, -1):
            if B % cand == 0:
                block_b = cand
                break
    assert B % block_b == 0, "block_b must divide B"

    # im2col: one extra HBM read+write of the input (half-width, bf16).  See the
    # TODO(synk) at the top for the fully fused alternative.
    patches = extract_patches(x, patch_size, Kp, compute_dtype)   # (B*N, Kp)

    def const_spec(shape):
        # Grid-constant operand: same block every step (Pallas skips the re-DMA).
        return pl.BlockSpec(shape, lambda b: tuple(0 for _ in shape))

    itemsize = jnp.dtype(compute_dtype).itemsize
    block_bytes = (block_b * N * Kp * itemsize            # patches tile
                   + block_b * (N + 1) * D * 4            # output tile
                   + Kp * D * itemsize                     # weight
                   + (N + 3) * D * 4)                      # bias + cls + pos
    # Explicit scoped-VMEM limit: >= 32 MiB (raises the v5e 16 MiB default),
    # <= 64 MiB (safe on v7x; v5e/v6e could go higher for larger blocks).
    vmem_limit = int(min(64 << 20, max(32 << 20, 3 * block_bytes)))

    return pl.pallas_call(
        vit_input_kernel,
        out_shape=jax.ShapeDtypeStruct((B, N + 1, D), jnp.float32),
        grid=(B // block_b,),
        in_specs=[
            pl.BlockSpec((block_b * N, Kp), lambda b: (b, 0)),   # patches (bf16)
            const_spec((Kp, D)),                                 # conv weight (bf16)
            const_spec((1, D)),                                  # conv bias
            const_spec((1, D)),                                  # cls token
            const_spec((N + 1, D)),                              # pos emb
        ],
        out_specs=pl.BlockSpec((block_b, N + 1, D), lambda b: (b, 0, 0)),
        compiler_params=pltpu.CompilerParams(
            dimension_semantics=("parallel",),
            vmem_limit_bytes=vmem_limit),
    )(patches, params["w_mat"], params["b2d"], params["cls2d"], params["pos2d"])


# ---------------------------------------------------------------------------
# Pure-JAX reference (mirrors the PyTorch forward exactly, via a real conv)
# ---------------------------------------------------------------------------
def vit_input_ref(x, params, patch_size):
    z = jax.lax.conv_general_dilated(
        x, params["conv_w"],
        window_strides=(patch_size, patch_size),
        padding="VALID",
        dimension_numbers=("NCHW", "OIHW", "NCHW"))
    z = z + params["conv_b"][None, :, None, None]          # (B, D, nh, nw)
    B, D, nh, nw = z.shape
    z = z.reshape(B, D, nh * nw).transpose(0, 2, 1)        # flatten(2).transpose(1,2)
    cls = jnp.broadcast_to(params["cls"], (B, 1, D))
    z = jnp.concatenate([cls, z], axis=1)                  # (B, N+1, D)
    return z + params["pos"]


# ---------------------------------------------------------------------------
if __name__ == "__main__":
    # Small shapes consistent with the module: VitInputLayer(in_channels=4,
    # emb_dim=128, num_patch_row=4, image_size=16) -> patch_size=4, 16 patches.
    B = 2
    in_channels = 4
    image_size = 16
    num_patch_row = 4
    emb_dim = 128                                          # lane-dense output
    patch_size = image_size // num_patch_row               # 4
    num_patch = num_patch_row ** 2                         # 16

    key = jax.random.PRNGKey(0)
    kx, kw, kb, kc, kp = jax.random.split(key, 5)
    x = jax.random.normal(kx, (B, in_channels, image_size, image_size), jnp.float32)
    conv_w = 0.05 * jax.random.normal(
        kw, (emb_dim, in_channels, patch_size, patch_size), jnp.float32)
    conv_b = 0.05 * jax.random.normal(kb, (emb_dim,), jnp.float32)
    cls_token = jax.random.normal(kc, (1, 1, emb_dim), jnp.float32)
    pos_emb = jax.random.normal(kp, (1, num_patch + 1, emb_dim), jnp.float32)

    params = prepare_params(conv_w, conv_b, cls_token, pos_emb)

    fwd = jax.jit(functools.partial(vit_input_layer, patch_size=patch_size))
    out = jax.block_until_ready(fwd(x, params))

    ref_params = dict(conv_w=conv_w, conv_b=conv_b, cls=cls_token, pos=pos_emb)
    ref = vit_input_ref(x, ref_params, patch_size)

    assert out.shape == (B, num_patch + 1, emb_dim)
    err = jnp.max(jnp.abs(out - ref))
    # bf16 matmul operands (f32 accumulate) -> loosened tolerance vs f32 reference.
    assert jnp.allclose(out, ref, atol=5e-2, rtol=5e-2), f"max abs err {err}"
    print("KERNEL_OK")
</pallas_src>

<mosaic_0001>
module attributes {stable_mosaic.version = 11 : i64} {
  func.func @vit_input_kernel(%arg0: i32, %arg1: memref<16x128xbf16, #tpu.memory_space<vmem>>, %arg2: memref<128x128xbf16, #tpu.memory_space<vmem>>, %arg3: memref<1x128xf32, #tpu.memory_space<vmem>>, %arg4: memref<1x128xf32, #tpu.memory_space<vmem>>, %arg5: memref<17x128xf32, #tpu.memory_space<vmem>>, %arg6: memref<1x17x128xf32, #tpu.memory_space<vmem>>) attributes {dimension_semantics = [#tpu.dimension_semantics<parallel>], iteration_bounds = array<i64: 2>, scalar_prefetch = 0 : i64, scratch_operands = 0 : i64, tpu.core_type = #tpu.core_type<tc>, window_params = [{transform_indices = @transform_0, window_bounds = array<i64: 16, 128>}, {pipeline_mode = #tpu.pipeline_mode<synchronous>, transform_indices = @transform_1, window_bounds = array<i64: 128, 128>}, {pipeline_mode = #tpu.pipeline_mode<synchronous>, transform_indices = @transform_2, window_bounds = array<i64: 1, 128>}, {pipeline_mode = #tpu.pipeline_mode<synchronous>, transform_indices = @transform_3, window_bounds = array<i64: 1, 128>}, {pipeline_mode = #tpu.pipeline_mode<synchronous>, transform_indices = @transform_4, window_bounds = array<i64: 17, 128>}, {transform_indices = @transform_5, window_bounds = array<i64: 1, 17, 128>}]} {
    %c0 = arith.constant 0 : index
    %c0_0 = arith.constant 0 : index
    %0 = vector.load %arg3[%c0, %c0_0] : memref<1x128xf32, #tpu.memory_space<vmem>>, vector<1x128xf32>
    %c0_1 = arith.constant 0 : index
    %c0_2 = arith.constant 0 : index
    %1 = vector.load %arg5[%c0_1, %c0_2] : memref<17x128xf32, #tpu.memory_space<vmem>>, vector<17x128xf32>
    %c0_3 = arith.constant 0 : index
    %c0_4 = arith.constant 0 : index
    %2 = vector.load %arg4[%c0_3, %c0_4] : memref<1x128xf32, #tpu.memory_space<vmem>>, vector<1x128xf32>
    %3 = vector.extract_strided_slice %1 {offsets = [0, 0], sizes = [1, 128], strides = [1, 1]} : vector<17x128xf32> to vector<1x128xf32>
    %4 = arith.addf %2, %3 : vector<1x128xf32>
    %5 = vector.extract_strided_slice %1 {offsets = [1, 0], sizes = [16, 128], strides = [1, 1]} : vector<17x128xf32> to vector<16x128xf32>
    %6 = vector.broadcast %0 : vector<1x128xf32> to vector<16x128xf32>
    %7 = arith.addf %5, %6 : vector<16x128xf32>
    %c0_5 = arith.constant 0 : index
    %c0_6 = arith.constant 0 : index
    %8 = vector.load %arg1[%c0_5, %c0_6] : memref<16x128xbf16, #tpu.memory_space<vmem>>, vector<16x128xbf16>
    %c0_7 = arith.constant 0 : index
    %c0_8 = arith.constant 0 : index
    %9 = vector.load %arg2[%c0_7, %c0_8] : memref<128x128xbf16, #tpu.memory_space<vmem>>, vector<128x128xbf16>
    %cst = arith.constant dense<0.000000e+00> : vector<16x128xf32>
    %10 = tpu.matmul %8, %9, %cst {dimension_numbers = #tpu.dot_dimension_numbers<[1], [0], [0], [1], [0, 0, 1, 1], [], []>} : vector<16x128xbf16>, vector<128x128xbf16>, vector<16x128xf32> -> vector<16x128xf32>
    %c0_9 = arith.constant 0 : index
    %c0_10 = arith.constant 0 : index
    %c0_11 = arith.constant 0 : index
    %11 = vector.load %arg6[%c0_9, %c0_10, %c0_11] : memref<1x17x128xf32, #tpu.memory_space<vmem>>, vector<1x1x128xf32>
    %12 = vector.shape_cast %11 : vector<1x1x128xf32> to vector<1x128xf32>
    %13 = vector.shape_cast %4 : vector<1x128xf32> to vector<1x1x128xf32>
    tpu.vector_store %arg6[%c0_9, %c0_10, %c0_11], %13 {strides = array<i32>} : memref<1x17x128xf32, #tpu.memory_space<vmem>>, vector<1x1x128xf32>,
    %14 = arith.addf %10, %7 : vector<16x128xf32>
    %c0_12 = arith.constant 0 : index
    %c1 = arith.constant 1 : index
    %c0_13 = arith.constant 0 : index
    %15 = vector.load %arg6[%c0_12, %c1, %c0_13] : memref<1x17x128xf32, #tpu.memory_space<vmem>>, vector<1x16x128xf32>
    %16 = vector.shape_cast %15 : vector<1x16x128xf32> to vector<16x128xf32>
    %17 = vector.shape_cast %14 : vector<16x128xf32> to vector<1x16x128xf32>
    tpu.vector_store %arg6[%c0_12, %c1, %c0_13], %17 {strides = array<i32>} : memref<1x17x128xf32, #tpu.memory_space<vmem>>, vector<1x16x128xf32>,
    return
  }
  func.func @transform_0(%arg0: i32) -> (i32, i32) {
    %c0_i32 = arith.constant 0 : i32
    %c0_i32_0 = arith.constant 0 : i32
    return %arg0, %c0_i32 : i32, i32
  }
  func.func @transform_1(%arg0: i32) -> (i32, i32) {
    %c0_i32 = arith.constant 0 : i32
    %c0_i32_0 = arith.constant 0 : i32
    %c0_i32_1 = arith.constant 0 : i32
    return %c0_i32, %c0_i32_0 : i32, i32
  }
  func.func @transform_2(%arg0: i32) -> (i32, i32) {
    %c0_i32 = arith.constant 0 : i32
    %c0_i32_0 = arith.constant 0 : i32
    %c0_i32_1 = arith.constant 0 : i32
    return %c0_i32, %c0_i32_0 : i32, i32
  }
  func.func @transform_3(%arg0: i32) -> (i32, i32) {
    %c0_i32 = arith.constant 0 : i32
    %c0_i32_0 = arith.constant 0 : i32
    %c0_i32_1 = arith.constant 0 : i32
    return %c0_i32, %c0_i32_0 : i32, i32
  }
  func.func @transform_4(%arg0: i32) -> (i32, i32) {
    %c0_i32 = arith.constant 0 : i32
    %c0_i32_0 = arith.constant 0 : i32
    %c0_i32_1 = arith.constant 0 : i32
    return %c0_i32, %c0_i32_0 : i32, i32
  }
  func.func @transform_5(%arg0: i32) -> (i32, i32, i32) {
    %c0_i32 = arith.constant 0 : i32
    %c0_i32_0 = arith.constant 0 : i32
    %c0_i32_1 = arith.constant 0 : i32
    return %arg0, %c0_i32, %c0_i32_0 : i32, i32, i32
  }
}

</mosaic_0001>

<bundles_post_ra>
// kernel: vit_input_layer.1
= control target key start
LH: loop header
LB: loop body
LE: loop exit
PB: predicated region body
PF: predicated region fallthrough
CT: control target
= control target key end

     0   :  { %s497_s18 = smov 0   ;;  %s558_s0 = inlined_call_operand.vmem [shape: bf16[32,128], index: 0, kind: input, shape index: {}]   ;;  %s559_s1 = inlined_call_operand.vmem [shape: bf16[128,128], index: 1, kind: input, shape index: {}]   ;;  %s560_s2 = inlined_call_operand.vmem [shape: f32[1,128], index: 2, kind: input, shape index: {}]   ;;  %s561_s3 = inlined_call_operand.vmem [shape: f32[1,128], index: 3, kind: input, shape index: {}]   ;;  %s562_s4 = inlined_call_operand.vmem [shape: f32[17,128], index: 4, kind: input, shape index: {}]   ;;  %s563_s5 = inlined_call_operand.vmem [shape: f32[2,17,128], index: 5, kind: output, shape index: {}]  }
   0x1 LB: > { %s394_s19 = sadd.s32 4294967295, %s465_s18   ;;  %p398_p0 = scmp.ge.s32.totalorder %s465_s18, 1  ;;  %s465_s18 = sphi %s497_s18, %s15_s18  }
   0x2   : > { %p188_p1 = scmp.lt.s32.totalorder %s465_s18, 3 }
   0x4   : > { %p189_p2 = pnand %p398_p0, %p188_p1 }
   0x5   : > { %p222_p3 = scmp.lt.s32.totalorder (!%p189_p2), %s394_s19, 1  ;;  %s399_s12 = sshll.u32 (!%p189_p2), %s394_s19, 1 }
   0x6   : > { %192 = sbr.rel (%p189_p2) target bundleno = 180 (0xb4), region = 40  ;;  %p217_p4 = scmp.lt.s32.totalorder (!%p189_p2), %s399_s12, 3 }
   0xb   : > { %v448_v0 = vld [vmem:[%s559_s1 + $0x38] sm:$0xff]  ;;  %v447_v1 = vld [vmem:[%s559_s1 + $0x30] sm:$0xff]  ;;  %s223_s24 = scalar_select %p222_p3, %s394_s19, 1  ;;  %v228_v2 = vld [vmem:[%s562_s4] sm:$0xff]  ;;  %vm315_vm0 = vcmask 1046528  }
   0xc   : > { %323 = vmatpush.bf16.msra.mxu0 %v448_v0  ;;  %v231_v3 = vld [vmem:[%s561_s3] sm:$0x1]  ;;  %v446_v5 = vld [vmem:[%s559_s1 + $0x28] sm:$0xff]  ;;  %v444_v7 = vld [vmem:[%s559_s1 + $0x18] sm:$0xff]  ;;  %s565_s12 = smov (!%p217_p4, %s399_s12), 3 }
   0xd   : > { %s449_s29 = smul.u32 24, %s223_s24  ;;  %v232_v4 = vadd.f32 %v231_v3, %v228_v2  ;;  %v445_v6 = vld [vmem:[%s559_s1 + $0x20] sm:$0xff]  ;;  %v443_v8 = vld [vmem:[%s559_s1 + $0x10] sm:$0xff]  ;;  %v442_v9 = vld [vmem:[%s559_s1 + $0x8] sm:$0xff]  ;;  %s400_s21 = sshll.u32 %s565_s12, 2 }
   0xe   : > { %v441_v10 = vld [vmem:[%s559_s1] sm:$0xff]  ;;  %s220_s25 = scalar_lea.vmem %s558_s0, %s400_s21  ;;  %v229_v13 = vld [vmem:[%s562_s4 + $0x8] sm:$0xff]  ;;  %v230_v18 = vld [vmem:[%s562_s4 + $0x10] sm:$0x1] }
   0xf   : > { %s523_s9 = scalar_lea.vmem %s563_s5, %s449_s29  ;;  %v440_v11 = vld [vmem:[%s220_s25] sm:$0xff] }
  0x10   : > { %324 = vmatpush.bf16.msra.mxu0 %v447_v1  ;;  %257 = vst [vmem:[%s523_s9] sm:$0x1] %v232_v4  ;;  %v458_v12 = vld [vmem:[%s560_s2] ss:$0 sm:$0xff] }
  0x11   : > { %v236_v14 = vadd.f32 %v458_v12, %v228_v2  ;;  %v237_v15 = vadd.f32 %v458_v12, %v229_v13  ;;  %v238_v20 = vadd.f32 %v458_v12, %v230_v18 }
  0x13   : > { %v316_v16 = vrot.slane %v236_v14, 1  ;;  %v317_v17 = vrot.slane %v237_v15, 1  ;;  %v319_v23 = vrot.slane %v238_v20, 1 }
  0x14   : > { %325 = vmatpush.bf16.msra.mxu0 %v446_v5 }
  0x15   : > { %v318_v19 = vsel %vm315_vm0, %v316_v16, %v317_v17  ;;  %v320_v24 = vsel %vm315_vm0, %v317_v17, %v319_v23 }
  0x18   : > { %326 = vmatpush.bf16.msra.mxu0 %v445_v6 }
  0x1c   : > { %327 = vmatpush.bf16.msra.mxu0 %v444_v7 }
  0x20   : > { %328 = vmatpush.bf16.msra.mxu0 %v443_v8 }
  0x24   : > { %329 = vmatpush.bf16.msra.mxu0 %v442_v9 }
  0x28   : > { %330 = vmatpush.bf16.msra.mxu0 %v441_v10 }
  0x2b   : > { %331 = vmatmul.bf16.vlgmr.msra.gmra.mxu0 %v440_v11 }
  0xa8   : > { %v332_v21 = vpop.f32.mrf.mxu0 }
  0xa9   : > { %v333_v22 = vadd.f32 %v332_v21, %v318_v19 }
  0xab   : > { %337 = vst [vmem:[%s523_s9 + $0x1] sm:$0xff] %v333_v22 }
  0xb0   : > { %v334_v25 = vpop.f32.mrf.mxu0 }
  0xb1   : > { %v335_v26 = vadd.f32 %v334_v25, %v320_v24 }
  0xb3   : > { %338 = vst [vmem:[%s523_s9 + $0x9] sm:$0xff] %v335_v26 }
  0xb4 PF: > { %s15_s18 = sadd.s32 1, %s465_s18  }
  0xb5   : > { %p12_p5 = scmp.ge.s32.totalorder %s15_s18, 4  }
  0xb7   :  { %14 = sbr.rel (!%p12_p5) target bundleno = 1 (0x1), region = 70 }

</bundles_post_ra>
